<compile_context>
chip_gen: v5e
topology: v5e:2x2
jax: 0.10.0
libtpu: 0.0.40
codegen_flags: <defaults>
</compile_context>

<pallas_src>
from functools import lru_cache

import numpy as np
import jax
import jax.numpy as jnp
from jax import lax
from jax.experimental import pallas as pl
from jax.experimental.pallas import tpu as pltpu


def _round_up(v, m):
    return ((v + m - 1) // m) * m


# -----------------------------------------------------------------------------
# host-side helpers
# -----------------------------------------------------------------------------
@lru_cache(maxsize=32)
def _dft_tables(n, keep):
    """cos/sin of the fftshift-folded DFT matrix (cached across calls/traces).

    shifted[k] = Y[(k - n//2) mod n]  ==  fftshift(fft(., n), axis=0)[k]
    (exact for even and odd n).
    """
    k = (np.arange(n, dtype=np.float64) - (n // 2))[:, None]
    m = np.arange(keep, dtype=np.float64)[None, :]
    ang = -2.0 * np.pi * k * m / n
    return np.cos(ang).astype(np.float32), np.sin(ang).astype(np.float32)


def _tpu_info():
    """(physical VMEM bytes per TensorCore, #TensorCores sharing the grid)."""
    vmem_cap = 64 * 1024 * 1024          # conservative default (v7x-sized)
    num_tc = 1
    try:
        info = pltpu.get_tpu_info()
        vmem_cap = int(getattr(info, "vmem_capacity_bytes", vmem_cap))
    except Exception:
        pass
    try:
        kind = jax.devices()[0].device_kind.lower()
        if "v7" in kind:                 # megacore: 2 TCs shard a "parallel" grid
            num_tc = 2
    except Exception:
        pass
    return vmem_cap, num_tc


def _choose_tiling(n, keep, cr, w_isz, x_isz, vmem_cap, num_tc):
    """Generation-aware tile sizing.

    Budget ~40% of physical VMEM for the pipelined blocks (double-buffered
    wr/wi + x block + two f32 output blocks), leaving headroom for Mosaic
    scratch.  Rows of the DFT matrices are tiled only when they would not fit;
    columns (C*R lanes) get the largest 128-multiple that fits the budget.
    """
    budget = max(8 << 20, int(0.40 * vmem_cap))
    row_align = 8 if w_isz >= 4 else 16

    def w_bytes(rt):                      # wr + wi, 2 pipeline buffers each
        return 2 * 2 * rt * keep * w_isz

    # --- rows of the DFT matrices
    row_tile = n
    if w_bytes(n) > budget // 2:
        max_rows = (budget // 2) // (4 * keep * w_isz)
        max_rows = max(row_align, (max_rows // row_align) * row_align)
        max_rows = min(max_rows, n)
        row_tile = max_rows
        cand, steps = max_rows, 0
        while cand >= row_align and steps < 1024:   # prefer an exact divisor of n
            if n % cand == 0:
                row_tile = cand
                break
            cand -= row_align
            steps += 1
    n_pad = _round_up(n, row_tile)

    # --- flattened chirp*range lanes (largest 128-multiple under the budget)
    cr128 = _round_up(cr, 128)
    per_col = 2 * keep * x_isz + 2 * 2 * row_tile * 4   # x block + 2 f32 out blocks
    col_budget = max(128 * per_col, budget - w_bytes(row_tile))
    col_tile = (col_budget // per_col // 128) * 128
    col_tile = int(max(128, min(col_tile, cr128, 32768)))

    # v7x only: if there is a single block, split columns so both TensorCores
    # get work; on v5e/v6e (1 TC) the split would just add a sequential step.
    if (num_tc > 1 and col_tile >= 256
            and (cr128 // col_tile) * (n_pad // row_tile) < num_tc):
        col_tile = (col_tile // 2 // 128) * 128
    cr_pad = _round_up(cr, col_tile)

    est = w_bytes(row_tile) + per_col * col_tile
    return row_tile, n_pad, col_tile, cr_pad, est


# -----------------------------------------------------------------------------
# kernel
# -----------------------------------------------------------------------------
def _angle_fft_kernel(wr_ref, wi_ref, x_ref, or_ref, oi_ref):
    x = x_ref[...]
    if x.dtype != wr_ref.dtype:           # in-kernel cast hides under output DMA
        x = x.astype(wr_ref.dtype)
    or_ref[...] = jnp.dot(wr_ref[...], x, preferred_element_type=jnp.float32)
    oi_ref[...] = jnp.dot(wi_ref[...], x, preferred_element_type=jnp.float32)


def _angle_fft_impl(x, n, window=None, *, compute_dtype=jnp.float32,
                    return_complex=True):
    """fftshift(fft(window * x, n=n, axis=0), axes=0) for real x of shape (A,C,R)."""
    A, C, R = x.shape
    keep = min(A, n)          # zero-padded rows of fft(x, n) contribute nothing
    cr = C * R

    if x.dtype not in (jnp.float32, jnp.bfloat16):
        x = x.astype(jnp.float32)
    x_flat = x.reshape(A, cr)[:keep]

    # window (module parameter), broadcast along the fft dim like PyTorch
    if window is None:
        win = jnp.ones((keep,), jnp.float32)
    else:
        win = jnp.broadcast_to(jnp.asarray(window, jnp.float32).reshape(-1),
                               (A,))[:keep]

    # fftshift-folded DFT matrices with the window folded into their columns
    cos_t, sin_t = _dft_tables(n, keep)
    wr = (jnp.asarray(cos_t) * win[None, :]).astype(compute_dtype)   # (n, keep)
    wi = (jnp.asarray(sin_t) * win[None, :]).astype(compute_dtype)   # (n, keep)

    # ---- generation-aware tiling / VMEM sizing
    vmem_cap, num_tc = _tpu_info()
    w_isz = np.dtype(compute_dtype).itemsize
    x_isz = np.dtype(x_flat.dtype).itemsize
    row_tile, n_pad, col_tile, cr_pad, est = _choose_tiling(
        n, keep, cr, w_isz, x_isz, vmem_cap, num_tc)

    if n_pad != n:            # only when row tiling cannot divide n evenly
        wr = jnp.pad(wr, ((0, n_pad - n), (0, 0)))
        wi = jnp.pad(wi, ((0, n_pad - n), (0, 0)))
    if cr_pad != cr:          # lane pad only when C*R is not col_tile aligned
        x_flat = jnp.pad(x_flat, ((0, 0), (0, cr_pad - cr)))

    # rows innermost -> the x column block stays resident across row steps
    grid = (cr_pad // col_tile, n_pad // row_tile)
    vmem_limit = int(min(max(est + (8 << 20), 32 << 20), int(0.9 * vmem_cap)))

    out_r, out_i = pl.pallas_call(
        _angle_fft_kernel,
        out_shape=(jax.ShapeDtypeStruct((n_pad, cr_pad), jnp.float32),
                   jax.ShapeDtypeStruct((n_pad, cr_pad), jnp.float32)),
        grid_spec=pltpu.PrefetchScalarGridSpec(
            num_scalar_prefetch=0,
            grid=grid,
            in_specs=[
                # DFT matrices: block index is constant along the column axis,
                # so Mosaic keeps them resident instead of re-DMAing per step.
                # (The VMEM estimate conservatively counts 2 pipeline buffers.)
                pl.BlockSpec((row_tile, keep), lambda j, i: (i, 0)),
                pl.BlockSpec((row_tile, keep), lambda j, i: (i, 0)),
                # x: f32 straight from HBM; cast (if any) happens in-kernel.
                pl.BlockSpec((keep, col_tile), lambda j, i: (0, j)),
            ],
            out_specs=(pl.BlockSpec((row_tile, col_tile), lambda j, i: (i, j)),
                       pl.BlockSpec((row_tile, col_tile), lambda j, i: (i, j))),
        ),
        compiler_params=pltpu.CompilerParams(
            dimension_semantics=("parallel", "parallel"),
            vmem_limit_bytes=vmem_limit),
    )(wr, wi, x_flat)

    if n_pad != n or cr_pad != cr:
        out_r = out_r[:n, :cr]
        out_i = out_i[:n, :cr]
    out_r = out_r.reshape(n, C, R)
    out_i = out_i.reshape(n, C, R)
    if return_complex:
        # single fused slice+pack pass under jit; pass return_complex=False to
        # get the raw real/imag f32 planes with no epilogue at all.
        return lax.complex(out_r, out_i).astype(jnp.complex64)
    return out_r, out_i


# jit: the host-side trig tables become trace-time constants (built once per
# (shape, n)), and the complex-pack epilogue fuses into one XLA pass.
angle_fft = jax.jit(_angle_fft_impl, static_argnums=(1,),
                    static_argnames=("compute_dtype", "return_complex"))


if __name__ == "__main__":
    # small shapes consistent with [Rx, chirp_loop_count, fft_rang]
    A, C, R = 4, 8, 16        # 4 Rx antennas, 8 chirps, 16 range bins
    n = 16                    # angle-FFT points

    key = jax.random.PRNGKey(0)
    x = jax.random.normal(key, (A, C, R), dtype=jnp.float32)

    # deterministic Hamming window of length Rx (module parameter)
    idx = np.arange(A, dtype=np.float32)
    window = jnp.asarray(0.54 - 0.46 * np.cos(2.0 * np.pi * idx / (A - 1)),
                         dtype=jnp.float32)

    out = jax.block_until_ready(angle_fft(x, n, window=window))

    # reference (plain JAX) — same semantics as the PyTorch module
    ref = jnp.fft.fftshift(
        jnp.fft.fft(x * window.reshape(-1, 1, 1), n=n, axis=0), axes=0
    ).astype(jnp.complex64)
    np.testing.assert_allclose(np.asarray(out), np.asarray(ref),
                               rtol=1e-2, atol=1e-2)

    # second case: n > A exercises the implicit zero-pad path
    n2 = 32
    out2 = jax.block_until_ready(angle_fft(x, n2, window=window))
    ref2 = jnp.fft.fftshift(
        jnp.fft.fft(x * window.reshape(-1, 1, 1), n=n2, axis=0), axes=0
    ).astype(jnp.complex64)
    np.testing.assert_allclose(np.asarray(out2), np.asarray(ref2),
                               rtol=1e-2, atol=1e-2)

    print("KERNEL_OK")
</pallas_src>

<mosaic_0001>
module attributes {stable_mosaic.version = 11 : i64} {
  func.func @_angle_fft_kernel(%arg0: i32, %arg1: i32, %arg2: memref<16x4xf32, #tpu.memory_space<vmem>>, %arg3: memref<16x4xf32, #tpu.memory_space<vmem>>, %arg4: memref<4x128xf32, #tpu.memory_space<vmem>>, %arg5: memref<16x128xf32, #tpu.memory_space<vmem>>, %arg6: memref<16x128xf32, #tpu.memory_space<vmem>>) attributes {dimension_semantics = [#tpu.dimension_semantics<parallel>, #tpu.dimension_semantics<parallel>], iteration_bounds = array<i64: 1, 1>, scalar_prefetch = 0 : i64, scratch_operands = 0 : i64, tpu.core_type = #tpu.core_type<tc>, window_params = [{transform_indices = @transform_0, window_bounds = array<i64: 16, 4>}, {transform_indices = @transform_1, window_bounds = array<i64: 16, 4>}, {transform_indices = @transform_2, window_bounds = array<i64: 4, 128>}, {transform_indices = @transform_3, window_bounds = array<i64: 16, 128>}, {transform_indices = @transform_4, window_bounds = array<i64: 16, 128>}]} {
    %c0 = arith.constant 0 : index
    %c0_0 = arith.constant 0 : index
    %0 = vector.load %arg4[%c0, %c0_0] : memref<4x128xf32, #tpu.memory_space<vmem>>, vector<4x128xf32>
    %c0_1 = arith.constant 0 : index
    %c0_2 = arith.constant 0 : index
    %1 = vector.load %arg2[%c0_1, %c0_2] : memref<16x4xf32, #tpu.memory_space<vmem>>, vector<16x4xf32>
    %cst = arith.constant dense<0.000000e+00> : vector<16x128xf32>
    %2 = tpu.matmul %1, %0, %cst {dimension_numbers = #tpu.dot_dimension_numbers<[1], [0], [0], [1], [0, 0, 1, 1], [], []>} : vector<16x4xf32>, vector<4x128xf32>, vector<16x128xf32> -> vector<16x128xf32>
    %c0_3 = arith.constant 0 : index
    %c0_4 = arith.constant 0 : index
    %3 = vector.load %arg5[%c0_3, %c0_4] : memref<16x128xf32, #tpu.memory_space<vmem>>, vector<16x128xf32>
    tpu.vector_store %arg5[%c0_3, %c0_4], %2 {strides = array<i32>} : memref<16x128xf32, #tpu.memory_space<vmem>>, vector<16x128xf32>,
    %c0_5 = arith.constant 0 : index
    %c0_6 = arith.constant 0 : index
    %4 = vector.load %arg3[%c0_5, %c0_6] : memref<16x4xf32, #tpu.memory_space<vmem>>, vector<16x4xf32>
    %cst_7 = arith.constant dense<0.000000e+00> : vector<16x128xf32>
    %5 = tpu.matmul %4, %0, %cst_7 {dimension_numbers = #tpu.dot_dimension_numbers<[1], [0], [0], [1], [0, 0, 1, 1], [], []>} : vector<16x4xf32>, vector<4x128xf32>, vector<16x128xf32> -> vector<16x128xf32>
    %c0_8 = arith.constant 0 : index
    %c0_9 = arith.constant 0 : index
    %6 = vector.load %arg6[%c0_8, %c0_9] : memref<16x128xf32, #tpu.memory_space<vmem>>, vector<16x128xf32>
    tpu.vector_store %arg6[%c0_8, %c0_9], %5 {strides = array<i32>} : memref<16x128xf32, #tpu.memory_space<vmem>>, vector<16x128xf32>,
    return
  }
  func.func @transform_0(%arg0: i32, %arg1: i32) -> (i32, i32) {
    %c0_i32 = arith.constant 0 : i32
    %c0_i32_0 = arith.constant 0 : i32
    return %arg1, %c0_i32 : i32, i32
  }
  func.func @transform_1(%arg0: i32, %arg1: i32) -> (i32, i32) {
    %c0_i32 = arith.constant 0 : i32
    %c0_i32_0 = arith.constant 0 : i32
    return %arg1, %c0_i32 : i32, i32
  }
  func.func @transform_2(%arg0: i32, %arg1: i32) -> (i32, i32) {
    %c0_i32 = arith.constant 0 : i32
    %c0_i32_0 = arith.constant 0 : i32
    return %c0_i32, %arg0 : i32, i32
  }
  func.func @transform_3(%arg0: i32, %arg1: i32) -> (i32, i32) {
    %c0_i32 = arith.constant 0 : i32
    return %arg1, %arg0 : i32, i32
  }
  func.func @transform_4(%arg0: i32, %arg1: i32) -> (i32, i32) {
    %c0_i32 = arith.constant 0 : i32
    return %arg1, %arg0 : i32, i32
  }
}

</mosaic_0001>

<bundles_post_ra>
// kernel: custom-call
= control target key start
LH: loop header
LB: loop body
LE: loop exit
PB: predicated region body
PF: predicated region fallthrough
CT: control target
= control target key end

     0   :  { %s105_s0 = inlined_call_operand.vmem [shape: f32[16,8,16], index: 0, kind: input, shape index: {}]   ;;  %s106_s1 = inlined_call_operand.vmem [shape: f32[16,8,16], index: 1, kind: input, shape index: {}]   ;;  %s107_s2 = inlined_call_operand.hbm [shape: c64[16,8,16], index: 2, kind: output, shape index: {}]  }
   0x1   :  { %s3_s11 = scalar_lea.hbm %s107_s2, 128 }
   0x2   :  { %4 = vsyncpa [#allocation0], 0  ;;  %s6_s14 = sshll.u32 %s105_s0, 4  ;;  %s8_s17 = sshll.u32 %s107_s2, 4  ;;  %s7_s14 = int_to_ptr.vmem [resolvable:$true] %s6_s14  ;;  %s9_s17 = int_to_ptr.hbm [resolvable:$true] %s8_s17 }
   0x3   :  { %11 = dma.vmem_to_hbm [thread:$0]  %s7_s14, 2048, %s9_s17, [#allocation0] }
   0x4   :  { %74 = dma.done.wait [#allocation0], 2048  }
   0x5   :  { %75 = vsyncadd [#allocation0], 4294965248 }
   0x6   :  { %14 = vsyncpa [#allocation0], 1 }
   0x7   :  { %15 = vsyncpa [#allocation1], 0  ;;  %s17_s20 = sshll.u32 %s106_s1, 4  ;;  %s19_s21 = sshll.u32 %s3_s11, 4  ;;  %s18_s20 = int_to_ptr.vmem [resolvable:$true] %s17_s20  ;;  %s20_s21 = int_to_ptr.hbm [resolvable:$true] %s19_s21 }
   0x8   :  { %22 = dma.vmem_to_hbm [thread:$0]  %s18_s20, 2048, %s20_s21, [#allocation1] }
   0x9   :  { %76 = dma.done.wait [#allocation1], 2048  }
   0xa   :  { %77 = vsyncadd [#allocation1], 4294965248 }
   0xb   :  { %25 = vsyncpa [#allocation1], 1 }

// kernel: _angle_fft_impl.1
= control target key start
LH: loop header
LB: loop body
LE: loop exit
PB: predicated region body
PF: predicated region fallthrough
CT: control target
= control target key end

     0   :  { %vm26_vm0 = vcmask 1043456   ;;  %vm19_vm1 = vcmask 31744   ;;  %s156_s2 = inlined_call_operand.vmem [shape: f32[4,128], index: 2, kind: input, shape index: {}]   ;;  %s157_s0 = inlined_call_operand.vmem [shape: f32[16,4], index: 0, kind: input, shape index: {}]   ;;  %s158_s1 = inlined_call_operand.vmem [shape: f32[16,4], index: 1, kind: input, shape index: {}]   ;;  %s159_s3 = inlined_call_operand.vmem [shape: f32[16,128], index: 3, kind: output, shape index: {0}]   ;;  %s160_s4 = inlined_call_operand.vmem [shape: f32[16,128], index: 4, kind: output, shape index: {1}]  }
   0x1   :  { %v16_v0 = vld [vmem:[%s156_s2] sm:$0xf]  ;;  %v18_v1 = vld [vmem:[%s157_s0 + $0x8] sm:$0xff] }
   0x2   :  { %v56_v2 = vld [vmem:[%s158_s1 + $0x8] sm:$0xff]  ;;  %102 = vmatpush.msk.msra.mxu2 %vm26_vm0, %v16_v0  ;;  %103 = vmatpush.msk.msra.mxu3 %vm26_vm0, %v16_v0  ;;  %v17_v3 = vld [vmem:[%s157_s0] sm:$0xff] }
   0x3   :  { %v55_v4 = vld [vmem:[%s158_s1] sm:$0xff]  ;;  %98 = vmatmul.msk.f32.vlgmr.msra.gmra.mxu2 %vm19_vm1, %v18_v1  ;;  %101 = vmatmul.msk.f32.vlgmr.msra.gmra.mxu3 %vm19_vm1, %v56_v2 }
   0x4   :  { %96 = vmatpush.msk.msra.mxu0 %vm26_vm0, %v16_v0  ;;  %99 = vmatpush.msk.msra.mxu1 %vm26_vm0, %v16_v0 }
   0x5   :  { %97 = vmatmul.msk.f32.vlgmr.msra.gmra.mxu0 %vm19_vm1, %v17_v3  ;;  %100 = vmatmul.msk.f32.vlgmr.msra.gmra.mxu1 %vm19_vm1, %v55_v4 }
  0x82   :  { %v47_v5 = vpop.f32.mrf.mxu0  ;;  %v80_v6 = vpop.f32.mrf.mxu1 }
  0x83   :  { %53 = vst [vmem:[%s159_s3] sm:$0xff] %v47_v5 }
  0x84   :  { %86 = vst [vmem:[%s160_s4] sm:$0xff] %v80_v6 }
  0x86   :  { %v50_v7 = vpop.f32.mrf.mxu2  ;;  %v83_v8 = vpop.f32.mrf.mxu3 }
  0x87   :  { %54 = vst [vmem:[%s159_s3 + $0x8] sm:$0xff] %v50_v7 }
  0x88   :  { %87 = vst [vmem:[%s160_s4 + $0x8] sm:$0xff] %v83_v8 }

</bundles_post_ra>
